<compile_context>
chip_gen: v6e
topology: v6e:2x2x1
jax: 0.10.0
libtpu: 0.0.40
codegen_flags: <defaults>
</compile_context>

<pallas_src>
from functools import partial

import jax
import jax.numpy as jnp
from jax.experimental import pallas as pl
from jax.experimental.pallas import tpu as pltpu


def _ensemble_kernel(num_act_layers, out_activation, x_ref, *refs):
    """One grid step runs the whole MLP for `models_per_step` (MB) models.

    refs = (W0, b0, W1, b1, ..., W_{L-1}, b_{L-1}, Wout, bout, out_ref)
    Per-step (leading grid dim squeezed) shapes:
      W_l  : (MB, in_l, out_l)   compact per-model weights (bf16), no zeros
      b_l  : (MB, 1, out_l)      f32
      Wout : (MB, 1, H_last)     f32 (tiny; used in a VPU multiply + lane sum)
      bout : (1, MB)             f32
      out  : (B, MB)             lane-dense store
    """
    out_ref = refs[-1]
    p = refs[:-1]

    w0 = p[0][...]                                   # (MB, D, H0)
    b0 = p[1][...].astype(jnp.float32)               # (MB, 1, H0)
    mb = w0.shape[0]

    x = x_ref[...].astype(w0.dtype)                  # (B, D)
    xb = jnp.broadcast_to(x[None], (mb,) + x.shape)  # (MB, B, D) — hoisted once

    # Layer 0: batched matmul over the MB models of this step, f32 accumulate.
    h = jnp.tanh(
        jnp.einsum('mbd,mdh->mbh', xb, w0,
                   preferred_element_type=jnp.float32) + b0)

    # Hidden layers (shallow nets -> static loop; weights are each used once
    # so live ranges stay bounded).
    for l in range(1, num_act_layers):
        w = p[2 * l][...]                            # (MB, Hin, Hout)
        b = p[2 * l + 1][...].astype(jnp.float32)    # (MB, 1, Hout)
        h = jnp.tanh(
            jnp.einsum('mbi,mio->mbo', h.astype(w.dtype), w,
                       preferred_element_type=jnp.float32) + b)

    # Output layer (out_size == 1 per model): VPU multiply + lane reduction,
    # then a tiny (MB, B) -> (B, MB) transpose so the store is lane-dense.
    wout = p[-2][...].astype(jnp.float32)            # (MB, 1, H_last)
    bout = p[-1][...].astype(jnp.float32)            # (1, MB)
    o = jnp.sum(h * wout, axis=-1)                   # (MB, B)
    o = o.T + bout                                   # (B, MB)
    if out_activation:
        o = jnp.tanh(o)
    out_ref[...] = o.astype(out_ref.dtype)


def pack_params(params, weight_dtype=jnp.bfloat16, models_per_step=None,
                model_step_target=128, vmem_weight_budget=4 << 20):
    """One-time repacking of stacked per-model params (hoisted off the fwd path).

    Returns (packed_list, meta).  Packed arrays carry a leading `n_steps` axis;
    each grid step streams the compact weights of `models_per_step` models.
    """
    num_act_layers = len(params) // 2 - 1            # input + hidden layers
    M = int(params[0].shape[0])
    wbytes = jnp.dtype(weight_dtype).itemsize

    per_model_bytes = 0
    for l in range(num_act_layers):
        fin, fout = int(params[2 * l].shape[1]), int(params[2 * l].shape[2])
        per_model_bytes += fin * fout * wbytes + fout * 4
    h_last = int(params[-2].shape[1])
    per_model_bytes += h_last * 4 + 4

    if models_per_step is None:
        mb = max(1, min(M, model_step_target))
        # Keep double-buffered per-step weights well inside VMEM
        # (v7x has 64 MiB physical, 32 MiB default scoped limit).
        while mb > 1 and 2 * mb * per_model_bytes > vmem_weight_budget:
            mb = (mb + 1) // 2
    else:
        mb = max(1, min(M, int(models_per_step)))
    n_steps = pl.cdiv(M, mb)
    mb = pl.cdiv(M, n_steps)                         # balance padding per step
    m_pad = mb * n_steps

    def pad(a):
        if m_pad == M:
            return a
        return jnp.pad(a, ((0, m_pad - M),) + ((0, 0),) * (a.ndim - 1))

    packed = []
    for l in range(num_act_layers):
        w = pad(params[2 * l])                       # (m_pad, in, out)
        b = pad(params[2 * l + 1])                   # (m_pad, out)
        packed.append(jnp.asarray(w, weight_dtype)
                      .reshape(n_steps, mb, w.shape[1], w.shape[2]))
        packed.append(jnp.asarray(b, jnp.float32)
                      .reshape(n_steps, mb, 1, b.shape[1]))
    wout = pad(params[-2])                           # (m_pad, h_last)
    bout = pad(params[-1])                           # (m_pad, 1)
    packed.append(jnp.asarray(wout, jnp.float32)
                  .reshape(n_steps, mb, 1, wout.shape[1]))
    packed.append(jnp.asarray(bout, jnp.float32).reshape(n_steps, 1, mb))

    meta = dict(num_act_layers=num_act_layers, num_models=M,
                models_per_step=mb, n_steps=n_steps)
    return packed, meta


def make_ensemble_forward(meta, out_activation=False):
    """Builds a jitted forward(x, packed) -> (B, num_models)."""
    num_act_layers = meta["num_act_layers"]
    mb = meta["models_per_step"]
    n_steps = meta["n_steps"]
    M = meta["num_models"]
    kernel = partial(_ensemble_kernel, num_act_layers, out_activation)

    @jax.jit
    def forward(x, packed):
        B, D = x.shape
        # x stays VMEM-resident (constant index map); per-step compact weights
        # are streamed / double-buffered by the grid over model blocks.
        in_specs = [pl.BlockSpec((B, D), lambda i: (0, 0))]
        for arr in packed:
            nd = arr.ndim
            in_specs.append(pl.BlockSpec(
                (None,) + arr.shape[1:],
                lambda i, _nd=nd: (i,) + (0,) * (_nd - 1)))

        out3 = pl.pallas_call(
            kernel,
            out_shape=jax.ShapeDtypeStruct((n_steps, B, mb), x.dtype),
            grid_spec=pltpu.PrefetchScalarGridSpec(
                num_scalar_prefetch=0,
                grid=(n_steps,),
                in_specs=in_specs,
                out_specs=pl.BlockSpec((None, B, mb), lambda i: (i, 0, 0)),
            ),
            compiler_params=pltpu.CompilerParams(
                dimension_semantics=("parallel",),
                vmem_limit_bytes=48 * 1024 * 1024),
        )(x, *packed)

        # (n_steps, B, mb) -> (B, num_models): tiny relayout outside the kernel.
        return out3.transpose(1, 0, 2).reshape(B, n_steps * mb)[:, :M]

    return forward


def serial_ensemble_dnn(x, params, out_activation=False, **pack_kwargs):
    """Convenience one-shot wrapper (packs + runs). Prefer pack_params +
    make_ensemble_forward when params are reused across calls."""
    packed, meta = pack_params(params, **pack_kwargs)
    return make_ensemble_forward(meta, out_activation)(x, packed)


def init_params(key, input_size, neural_size, num_models, dtype=jnp.float32):
    """PyTorch-Linear-style init, stacked across the ensemble.

    Returns [W0, b0, ..., W_{L-1}, b_{L-1}, Wout, bout] with
    W_l: (M, in_l, out_l), b_l: (M, out_l), Wout: (M, H_last), bout: (M, 1).
    """
    sizes = [input_size] + list(neural_size)
    params = []
    for i in range(len(sizes) - 1):
        fan_in, fan_out = sizes[i], sizes[i + 1]
        key, kw, kb = jax.random.split(key, 3)
        bound = 1.0 / (fan_in ** 0.5)
        params.append(jax.random.uniform(kw, (num_models, fan_in, fan_out),
                                         dtype, -bound, bound))
        params.append(jax.random.uniform(kb, (num_models, fan_out),
                                         dtype, -bound, bound))
    fan_in = sizes[-1]                               # output layer, out_size=1
    key, kw, kb = jax.random.split(key, 3)
    bound = 1.0 / (fan_in ** 0.5)
    params.append(jax.random.uniform(kw, (num_models, fan_in),
                                     dtype, -bound, bound))
    params.append(jax.random.uniform(kb, (num_models, 1),
                                     dtype, -bound, bound))
    return params


def reference(x, params, out_activation=False):
    """Pure-JAX reference identical to the PyTorch forward."""
    L = len(params) // 2 - 1
    M = params[0].shape[0]
    outs = []
    for m in range(M):
        h = x
        for l in range(L):
            h = jnp.tanh(h @ params[2 * l][m] + params[2 * l + 1][m])
        o = h @ params[-2][m][:, None] + params[-1][m]        # (B, 1)
        if out_activation:
            o = jnp.tanh(o)
        outs.append(o)
    return jnp.concatenate(outs, axis=1)                      # (B, M)


if __name__ == "__main__":
    key = jax.random.PRNGKey(0)
    B, input_size = 8, 16
    hidden_layer = 2
    neural_size = [32, 32, 32]          # len = hidden_layer + 1
    num_models = 4
    out_activation = False

    kx, kp = jax.random.split(key)
    x = jax.random.normal(kx, (B, input_size), jnp.float32)
    params = init_params(kp, input_size, neural_size, num_models)
    ref = reference(x, params, out_activation=out_activation)

    # Exact-math check (f32-streamed weights) validates the kernel itself.
    packed32, meta32 = pack_params(params, weight_dtype=jnp.float32)
    fwd32 = make_ensemble_forward(meta32, out_activation=out_activation)
    out32 = jax.block_until_ready(fwd32(x, packed32))
    assert out32.shape == (B, num_models), out32.shape
    assert jnp.allclose(out32, ref, atol=1e-4, rtol=1e-4), \
        float(jnp.max(jnp.abs(out32 - ref)))

    # Default fast path: bf16-streamed weights, f32 accumulation (looser tol).
    packed, meta = pack_params(params)
    fwd = make_ensemble_forward(meta, out_activation=out_activation)
    out = jax.block_until_ready(fwd(x, packed))
    assert out.shape == (B, num_models), out.shape
    assert jnp.allclose(out, ref, atol=3e-2, rtol=3e-2), \
        float(jnp.max(jnp.abs(out - ref)))

    print("KERNEL_OK")
</pallas_src>

<mosaic_0001>
module attributes {stable_mosaic.version = 11 : i64} {
  func.func @_ensemble_kernel(%arg0: i32, %arg1: memref<8x16xf32, #tpu.memory_space<vmem>>, %arg2: memref<1x4x16x32xf32, #tpu.memory_space<vmem>>, %arg3: memref<1x4x1x32xf32, #tpu.memory_space<vmem>>, %arg4: memref<1x4x32x32xf32, #tpu.memory_space<vmem>>, %arg5: memref<1x4x1x32xf32, #tpu.memory_space<vmem>>, %arg6: memref<1x4x32x32xf32, #tpu.memory_space<vmem>>, %arg7: memref<1x4x1x32xf32, #tpu.memory_space<vmem>>, %arg8: memref<1x4x1x32xf32, #tpu.memory_space<vmem>>, %arg9: memref<1x1x4xf32, #tpu.memory_space<vmem>>, %arg10: memref<1x8x4xf32, #tpu.memory_space<vmem>>) attributes {dimension_semantics = [#tpu.dimension_semantics<parallel>], iteration_bounds = array<i64: 1>, scalar_prefetch = 0 : i64, scratch_operands = 0 : i64, tpu.core_type = #tpu.core_type<tc>, window_params = [{pipeline_mode = #tpu.pipeline_mode<synchronous>, transform_indices = @transform_0, window_bounds = array<i64: 8, 16>}, {transform_indices = @transform_1, window_bounds = array<i64: 1, 4, 16, 32>}, {transform_indices = @transform_2, window_bounds = array<i64: 1, 4, 1, 32>}, {transform_indices = @transform_3, window_bounds = array<i64: 1, 4, 32, 32>}, {transform_indices = @transform_4, window_bounds = array<i64: 1, 4, 1, 32>}, {transform_indices = @transform_5, window_bounds = array<i64: 1, 4, 32, 32>}, {transform_indices = @transform_6, window_bounds = array<i64: 1, 4, 1, 32>}, {transform_indices = @transform_7, window_bounds = array<i64: 1, 4, 1, 32>}, {transform_indices = @transform_8, window_bounds = array<i64: 1, 1, 4>}, {transform_indices = @transform_9, window_bounds = array<i64: 1, 8, 4>}]} {
    %c0 = arith.constant 0 : index
    %c0_0 = arith.constant 0 : index
    %c0_1 = arith.constant 0 : index
    %c0_2 = arith.constant 0 : index
    %0 = vector.load %arg2[%c0, %c0_0, %c0_1, %c0_2] : memref<1x4x16x32xf32, #tpu.memory_space<vmem>>, vector<1x4x16x32xf32>
    %1 = vector.shape_cast %0 : vector<1x4x16x32xf32> to vector<4x16x32xf32>
    %c0_3 = arith.constant 0 : index
    %c0_4 = arith.constant 0 : index
    %c0_5 = arith.constant 0 : index
    %c0_6 = arith.constant 0 : index
    %2 = vector.load %arg3[%c0_3, %c0_4, %c0_5, %c0_6] : memref<1x4x1x32xf32, #tpu.memory_space<vmem>>, vector<1x4x1x32xf32>
    %3 = vector.shape_cast %2 : vector<1x4x1x32xf32> to vector<4x1x32xf32>
    %c0_7 = arith.constant 0 : index
    %c0_8 = arith.constant 0 : index
    %4 = vector.load %arg1[%c0_7, %c0_8] : memref<8x16xf32, #tpu.memory_space<vmem>>, vector<8x16xf32>
    %5 = vector.shape_cast %4 : vector<8x16xf32> to vector<1x8x16xf32>
    %6 = vector.shape_cast %5 : vector<1x8x16xf32> to vector<1x8x16xf32>
    %7 = vector.broadcast %6 : vector<1x8x16xf32> to vector<4x8x16xf32>
    "tpu.trace_start"() <{level = 10 : i32, message = "mbd,mdh->mbh"}> : () -> ()
    %cst = arith.constant dense<0.000000e+00> : vector<4x8x32xf32>
    %8 = tpu.matmul %7, %1, %cst {dimension_numbers = #tpu.dot_dimension_numbers<[2], [1], [1], [2], [0, 0, 0, 1, 1, 2], [0], [0]>} : vector<4x8x16xf32>, vector<4x16x32xf32>, vector<4x8x32xf32> -> vector<4x8x32xf32>
    "tpu.trace_stop"() : () -> ()
    %9 = vector.broadcast %3 : vector<4x1x32xf32> to vector<4x8x32xf32>
    %10 = arith.addf %8, %9 : vector<4x8x32xf32>
    %11 = math.tanh %10 : vector<4x8x32xf32>
    %c0_9 = arith.constant 0 : index
    %c0_10 = arith.constant 0 : index
    %c0_11 = arith.constant 0 : index
    %c0_12 = arith.constant 0 : index
    %12 = vector.load %arg4[%c0_9, %c0_10, %c0_11, %c0_12] : memref<1x4x32x32xf32, #tpu.memory_space<vmem>>, vector<1x4x32x32xf32>
    %13 = vector.shape_cast %12 : vector<1x4x32x32xf32> to vector<4x32x32xf32>
    %c0_13 = arith.constant 0 : index
    %c0_14 = arith.constant 0 : index
    %c0_15 = arith.constant 0 : index
    %c0_16 = arith.constant 0 : index
    %14 = vector.load %arg5[%c0_13, %c0_14, %c0_15, %c0_16] : memref<1x4x1x32xf32, #tpu.memory_space<vmem>>, vector<1x4x1x32xf32>
    %15 = vector.shape_cast %14 : vector<1x4x1x32xf32> to vector<4x1x32xf32>
    "tpu.trace_start"() <{level = 10 : i32, message = "mbi,mio->mbo"}> : () -> ()
    %cst_17 = arith.constant dense<0.000000e+00> : vector<4x8x32xf32>
    %16 = tpu.matmul %11, %13, %cst_17 {dimension_numbers = #tpu.dot_dimension_numbers<[2], [1], [1], [2], [0, 0, 0, 1, 1, 2], [0], [0]>} : vector<4x8x32xf32>, vector<4x32x32xf32>, vector<4x8x32xf32> -> vector<4x8x32xf32>
    "tpu.trace_stop"() : () -> ()
    %17 = vector.broadcast %15 : vector<4x1x32xf32> to vector<4x8x32xf32>
    %18 = arith.addf %16, %17 : vector<4x8x32xf32>
    %19 = math.tanh %18 : vector<4x8x32xf32>
    %c0_18 = arith.constant 0 : index
    %c0_19 = arith.constant 0 : index
    %c0_20 = arith.constant 0 : index
    %c0_21 = arith.constant 0 : index
    %20 = vector.load %arg6[%c0_18, %c0_19, %c0_20, %c0_21] : memref<1x4x32x32xf32, #tpu.memory_space<vmem>>, vector<1x4x32x32xf32>
    %21 = vector.shape_cast %20 : vector<1x4x32x32xf32> to vector<4x32x32xf32>
    %c0_22 = arith.constant 0 : index
    %c0_23 = arith.constant 0 : index
    %c0_24 = arith.constant 0 : index
    %c0_25 = arith.constant 0 : index
    %22 = vector.load %arg7[%c0_22, %c0_23, %c0_24, %c0_25] : memref<1x4x1x32xf32, #tpu.memory_space<vmem>>, vector<1x4x1x32xf32>
    %23 = vector.shape_cast %22 : vector<1x4x1x32xf32> to vector<4x1x32xf32>
    "tpu.trace_start"() <{level = 10 : i32, message = "mbi,mio->mbo"}> : () -> ()
    %cst_26 = arith.constant dense<0.000000e+00> : vector<4x8x32xf32>
    %24 = tpu.matmul %19, %21, %cst_26 {dimension_numbers = #tpu.dot_dimension_numbers<[2], [1], [1], [2], [0, 0, 0, 1, 1, 2], [0], [0]>} : vector<4x8x32xf32>, vector<4x32x32xf32>, vector<4x8x32xf32> -> vector<4x8x32xf32>
    "tpu.trace_stop"() : () -> ()
    %25 = vector.broadcast %23 : vector<4x1x32xf32> to vector<4x8x32xf32>
    %26 = arith.addf %24, %25 : vector<4x8x32xf32>
    %27 = math.tanh %26 : vector<4x8x32xf32>
    %c0_27 = arith.constant 0 : index
    %c0_28 = arith.constant 0 : index
    %c0_29 = arith.constant 0 : index
    %c0_30 = arith.constant 0 : index
    %28 = vector.load %arg8[%c0_27, %c0_28, %c0_29, %c0_30] : memref<1x4x1x32xf32, #tpu.memory_space<vmem>>, vector<1x4x1x32xf32>
    %29 = vector.shape_cast %28 : vector<1x4x1x32xf32> to vector<4x1x32xf32>
    %c0_31 = arith.constant 0 : index
    %c0_32 = arith.constant 0 : index
    %c0_33 = arith.constant 0 : index
    %30 = vector.load %arg9[%c0_31, %c0_32, %c0_33] : memref<1x1x4xf32, #tpu.memory_space<vmem>>, vector<1x1x4xf32>
    %31 = vector.shape_cast %30 : vector<1x1x4xf32> to vector<1x4xf32>
    %32 = vector.broadcast %29 : vector<4x1x32xf32> to vector<4x8x32xf32>
    %33 = arith.mulf %27, %32 : vector<4x8x32xf32>
    %cst_34 = arith.constant dense<0.000000e+00> : vector<4x8xf32>
    %34 = vector.multi_reduction <add>, %33, %cst_34 [2] : vector<4x8x32xf32> to vector<4x8xf32>
    %35 = tpu.transpose %34, [1, 0] : vector<4x8xf32> -> vector<8x4xf32>
    %36 = vector.broadcast %31 : vector<1x4xf32> to vector<8x4xf32>
    %37 = arith.addf %35, %36 : vector<8x4xf32>
    %c0_35 = arith.constant 0 : index
    %c0_36 = arith.constant 0 : index
    %c0_37 = arith.constant 0 : index
    %38 = vector.load %arg10[%c0_35, %c0_36, %c0_37] : memref<1x8x4xf32, #tpu.memory_space<vmem>>, vector<1x8x4xf32>
    %39 = vector.shape_cast %38 : vector<1x8x4xf32> to vector<8x4xf32>
    %40 = vector.shape_cast %37 : vector<8x4xf32> to vector<1x8x4xf32>
    tpu.vector_store %arg10[%c0_35, %c0_36, %c0_37], %40 {strides = array<i32>} : memref<1x8x4xf32, #tpu.memory_space<vmem>>, vector<1x8x4xf32>,
    return
  }
  func.func @transform_0(%arg0: i32) -> (i32, i32) {
    %c0_i32 = arith.constant 0 : i32
    %c0_i32_0 = arith.constant 0 : i32
    %c0_i32_1 = arith.constant 0 : i32
    return %c0_i32, %c0_i32_0 : i32, i32
  }
  func.func @transform_1(%arg0: i32) -> (i32, i32, i32, i32) {
    %c0_i32 = arith.constant 0 : i32
    %c0_i32_0 = arith.constant 0 : i32
    %c0_i32_1 = arith.constant 0 : i32
    %c0_i32_2 = arith.constant 0 : i32
    return %arg0, %c0_i32, %c0_i32_0, %c0_i32_1 : i32, i32, i32, i32
  }
  func.func @transform_2(%arg0: i32) -> (i32, i32, i32, i32) {
    %c0_i32 = arith.constant 0 : i32
    %c0_i32_0 = arith.constant 0 : i32
    %c0_i32_1 = arith.constant 0 : i32
    %c0_i32_2 = arith.constant 0 : i32
    return %arg0, %c0_i32, %c0_i32_0, %c0_i32_1 : i32, i32, i32, i32
  }
  func.func @transform_3(%arg0: i32) -> (i32, i32, i32, i32) {
    %c0_i32 = arith.constant 0 : i32
    %c0_i32_0 = arith.constant 0 : i32
    %c0_i32_1 = arith.constant 0 : i32
    %c0_i32_2 = arith.constant 0 : i32
    return %arg0, %c0_i32, %c0_i32_0, %c0_i32_1 : i32, i32, i32, i32
  }
  func.func @transform_4(%arg0: i32) -> (i32, i32, i32, i32) {
    %c0_i32 = arith.constant 0 : i32
    %c0_i32_0 = arith.constant 0 : i32
    %c0_i32_1 = arith.constant 0 : i32
    %c0_i32_2 = arith.constant 0 : i32
    return %arg0, %c0_i32, %c0_i32_0, %c0_i32_1 : i32, i32, i32, i32
  }
  func.func @transform_5(%arg0: i32) -> (i32, i32, i32, i32) {
    %c0_i32 = arith.constant 0 : i32
    %c0_i32_0 = arith.constant 0 : i32
    %c0_i32_1 = arith.constant 0 : i32
    %c0_i32_2 = arith.constant 0 : i32
    return %arg0, %c0_i32, %c0_i32_0, %c0_i32_1 : i32, i32, i32, i32
  }
  func.func @transform_6(%arg0: i32) -> (i32, i32, i32, i32) {
    %c0_i32 = arith.constant 0 : i32
    %c0_i32_0 = arith.constant 0 : i32
    %c0_i32_1 = arith.constant 0 : i32
    %c0_i32_2 = arith.constant 0 : i32
    return %arg0, %c0_i32, %c0_i32_0, %c0_i32_1 : i32, i32, i32, i32
  }
  func.func @transform_7(%arg0: i32) -> (i32, i32, i32, i32) {
    %c0_i32 = arith.constant 0 : i32
    %c0_i32_0 = arith.constant 0 : i32
    %c0_i32_1 = arith.constant 0 : i32
    %c0_i32_2 = arith.constant 0 : i32
    return %arg0, %c0_i32, %c0_i32_0, %c0_i32_1 : i32, i32, i32, i32
  }
  func.func @transform_8(%arg0: i32) -> (i32, i32, i32) {
    %c0_i32 = arith.constant 0 : i32
    %c0_i32_0 = arith.constant 0 : i32
    %c0_i32_1 = arith.constant 0 : i32
    return %arg0, %c0_i32, %c0_i32_0 : i32, i32, i32
  }
  func.func @transform_9(%arg0: i32) -> (i32, i32, i32) {
    %c0_i32 = arith.constant 0 : i32
    %c0_i32_0 = arith.constant 0 : i32
    %c0_i32_1 = arith.constant 0 : i32
    return %arg0, %c0_i32, %c0_i32_0 : i32, i32, i32
  }
}

</mosaic_0001>

<bundles_post_ra>
// kernel: forward.1
= control target key start
LH: loop header
LB: loop body
LE: loop exit
PB: predicated region body
PF: predicated region fallthrough
CT: control target
= control target key end

     0   :  { %14 = vsyncpa [#allocation3], 0  ;;  %s1771_s0 = inlined_call_operand.hbm [shape: f32[8,16], index: 0, kind: input, shape index: {}]   ;;  %s1772_s1 = inlined_call_operand.hbm [shape: f32[1,4,16,32], index: 1, kind: input, shape index: {}]   ;;  %s1773_s2 = inlined_call_operand.hbm [shape: f32[1,4,1,32], index: 2, kind: input, shape index: {}]   ;;  %s1774_s3 = inlined_call_operand.hbm [shape: f32[1,4,32,32], index: 3, kind: input, shape index: {}]   ;;  %s1775_s4 = inlined_call_operand.vmem [shape: f32[1,4,1,32], index: 4, kind: input, shape index: {}]   ;;  %s1776_s5 = inlined_call_operand.hbm [shape: f32[1,4,32,32], index: 5, kind: input, shape index: {}]   ;;  %s1777_s6 = inlined_call_operand.vmem [shape: f32[1,4,1,32], index: 6, kind: input, shape index: {}]   ;;  %s1778_s7 = inlined_call_operand.vmem [shape: f32[1,4,1,32], index: 7, kind: input, shape index: {}]   ;;  %s1779_s8 = inlined_call_operand.vmem [shape: f32[1,1,4], index: 8, kind: input, shape index: {}]   ;;  %s1780_s9 = inlined_call_operand.vmem [shape: f32[1,8,4], index: 9, kind: output, shape index: {}]  }
   0x1   :  { %15 = vsyncpa [#allocation5], 0 }
   0x2   :  { %16 = vsyncpa [#allocation8], 0  ;;  %s1564_s30 = smov [#allocation4]  }
   0x3   :  { %s32_s10 = sshll.u32 %s1564_s30, 4  ;;  %s33_s10 = int_to_ptr.vmem [resolvable:$true] %s32_s10 }
   0x4   :  { %s1466_s11 = scalar_lea.vmem %s33_s10, 1024  ;;  %p1471_p1 = scmp.lt.s32.totalorder %s33_s10, %s33_s10 }
   0x5   :  { %p1467_p0 = scmp.ne.s32.totalorder %s33_s10, %s1466_s11  ;;  %p1472_p2 = scmp.lt.s32.totalorder %s1466_s11, %s1466_s11 }
   0x7   :  { %p1473_p3 = por %p1472_p2, %p1471_p1 }
   0x9   :  { %p1474_p4 = pnand %p1473_p3, %p1467_p0 }
   0xb   :  { %1477 = shalt.err (!%p1474_p4)
}
   0xc   :  { %s1565_s12 = smov 128   ;;  %s1566_s13 = smov 8  }
   0xd   :  { %38 = dma.hbm_to_vmem [thread:$0]  %s1772_s1, 1024, %s33_s10, [#allocation5], %s1565_s12, %s1565_s12, %s1566_s13  }
   0xe   :  { %s1567_s16 = smov [#allocation7]   ;;  %s1568_s18 = smov [#allocation2]  }
   0xf   :  { %s56_s17 = sshll.u32 %s1567_s16, 4  ;;  %s23_s19 = sshll.u32 %s1568_s18, 4  ;;  %s57_s17 = int_to_ptr.vmem [resolvable:$true] %s56_s17  ;;  %s24_s19 = int_to_ptr.vmem [resolvable:$true] %s23_s19 }
  0x10   :  { %s1486_s20 = scalar_lea.vmem %s57_s17, 2048  ;;  %p1491_p6 = scmp.lt.s32.totalorder %s57_s17, %s57_s17 }
  0x11   :  { %p1487_p5 = scmp.ne.s32.totalorder %s57_s17, %s1486_s20  ;;  %p1492_p7 = scmp.lt.s32.totalorder %s1486_s20, %s1486_s20 }
  0x13   :  { %p1493_p8 = por %p1492_p7, %p1491_p6 }
  0x15   :  { %p1494_p9 = pnand %p1493_p8, %p1487_p5 }
  0x17   :  { %1497 = shalt.err (!%p1494_p9)
}
  0x18   :  { %62 = dma.hbm_to_vmem [thread:$0]  %s1774_s3, 2048, %s57_s17, [#allocation8], %s1565_s12, %s1565_s12, %s1566_s13  }
  0x19   :  { %s1506_s1 = scalar_lea.vmem %s24_s19, 128  ;;  %p1511_p11 = scmp.lt.s32.totalorder %s24_s19, %s24_s19 }
  0x1a   :  { %p1507_p10 = scmp.ne.s32.totalorder %s24_s19, %s1506_s1  ;;  %p1512_p12 = scmp.lt.s32.totalorder %s1506_s1, %s1506_s1 }
  0x1c   :  { %p1513_p13 = por %p1512_p12, %p1511_p11 }
  0x1e   :  { %p1514_p0 = pnand %p1513_p13, %p1507_p10 }
  0x20   :  { %1517 = shalt.err (!%p1514_p0)
}
  0x21   :  { %26 = dma.hbm_to_vmem [thread:$0]  %s1771_s0, 128, %s24_s19, [#allocation3]  }
  0x22   :  { %s1569_s25 = smov [#allocation6]  }
  0x23   :  { %s44_s26 = sshll.u32 %s1569_s25, 4  ;;  %s45_s26 = int_to_ptr.vmem [resolvable:$true] %s44_s26 }
  0x24   :  { %s1526_s27 = scalar_lea.vmem %s45_s26, 64  ;;  %p1531_p2 = scmp.lt.s32.totalorder %s45_s26, %s45_s26 }
  0x25   :  { %p1527_p1 = scmp.ne.s32.totalorder %s45_s26, %s1526_s27  ;;  %p1532_p3 = scmp.lt.s32.totalorder %s1526_s27, %s1526_s27 }
  0x27   :  { %p1533_p4 = por %p1532_p3, %p1531_p2 }
  0x29   :  { %p1534_p5 = pnand %p1533_p4, %p1527_p1 }
  0x2b   :  { %1537 = shalt.err (!%p1534_p5)
}
  0x2c   :  { %s1570_s3 = smov 16   ;;  %s1571_s28 = smov 1  }
  0x2d   :  { %50 = dma.hbm_to_vmem [thread:$0]  %s1773_s2, 64, %s45_s26, [#allocation5], %s1570_s3, %s1570_s3, %s1571_s28  }
  0x2e   :  { %s1572_s10 = smov [#allocation9]  }
  0x2f   :  { %s70_s11 = sshll.u32 %s1572_s10, 4  ;;  %s71_s11 = int_to_ptr.vmem [resolvable:$true] %s70_s11 }
  0x30   :  { %s1546_s0 = scalar_lea.vmem %s71_s11, 2048  ;;  %p1551_p7 = scmp.lt.s32.totalorder %s71_s11, %s71_s11 }
  0x31   :  { %p1547_p6 = scmp.ne.s32.totalorder %s71_s11, %s1546_s0  ;;  %p1552_p8 = scmp.lt.s32.totalorder %s1546_s0, %s1546_s0 }
  0x33   :  { %p1553_p9 = por %p1552_p8, %p1551_p7 }
  0x35   :  { %p1554_p10 = pnand %p1553_p9, %p1547_p6 }
  0x37   :  { %1557 = shalt.err (!%p1554_p10)
}
  0x38   :  { %76 = dma.hbm_to_vmem [thread:$0]  %s1776_s5, 2048, %s71_s11, [#allocation8], %s1565_s12, %s1565_s12, %s1566_s13  }
  0x39   :  { %1558 = dma.done.wait [#allocation3], 128  }
  0x3a   :  { %1559 = vsyncadd [#allocation3], 4294967168 }
  0x3b   :  { %1560 = dma.done.wait [#allocation5], 1088  }
  0x3c   :  { %1561 = vsyncadd [#allocation5], 4294966208 }
  0x3d   :  { %1562 = dma.done.wait [#allocation8], 4096  }
  0x3e   :  { %1563 = vsyncadd [#allocation8], 4294963200  ;;  %v1573_v0 = vmov 0.0   ;;  %vm1574_vm0 = vmmov 0   ;;  %v99_v1 = vld [vmem:[#allocation4 + $0x8] sm:$0xff]  ;;  %v98_v2 = vld [vmem:[#allocation4] sm:$0xff] }
  0x3f   :  { %1307 = vmatprep.subr.mxu0 %v1573_v0  ;;  %1314 = vmatprep.subr.mxu1 %v1573_v0  ;;  %v101_v3 = vld [vmem:[#allocation4 + $0x18] sm:$0xff]  ;;  %vm135_vm1 = vcmask 130048   ;;  %v100_v5 = vld [vmem:[#allocation4 + $0x10] sm:$0xff]  ;;  %v103_v6 = vld [vmem:[#allocation4 + $0x28] sm:$0xff]  ;;  %vm467_vm2 = vcmask 261120   ;;  %vm1171_vm3 = vcmask 1041409  }
  0x40   :  { %1311 = vmatprep.mubr.msk.f32.mxu0 %vm1574_vm0, %v1573_v0  ;;  %1318 = vmatprep.mubr.msk.f32.mxu1 %vm1574_vm0, %v1573_v0  ;;  %v110_v4 = vld [vmem:[#allocation2] sm:$0xff]  ;;  %v102_v7 = vld [vmem:[#allocation4 + $0x20] sm:$0xff]  ;;  %v104_v9 = vld [vmem:[#allocation4 + $0x30] sm:$0xff]  ;;  %vm1173_vm4 = vcmask 1042434   ;;  %vm1175_vm5 = vcmask 1043459   ;;  %vm1217_vm6 = vcmask 31744  }
  0x41   :  { %1308 = vmatpush3.msra.mxu0 %v99_v1  ;;  %1315 = vmatpush3.msra.mxu1 %v101_v3  ;;  %v105_v8 = vld [vmem:[#allocation4 + $0x38] sm:$0xff]  ;;  %v424_v13 = vld [vmem:[#allocation7 + $0x8] sm:$0xff]  ;;  %v423_v15 = vld [vmem:[#allocation7] sm:$0xff] }
  0x42   :  { %1309 = vmatprep.subr.mxu0 %v1573_v0  ;;  %1316 = vmatprep.subr.mxu1 %v1573_v0  ;;  %v426_v10 = vld [vmem:[#allocation7 + $0x18] sm:$0xff]  ;;  %v425_v11 = vld [vmem:[#allocation7 + $0x10] sm:$0xff]  ;;  %v428_v16 = vld [vmem:[#allocation7 + $0x28] sm:$0xff] }
  0x43   :  { %1310 = vmatpush3.msra.mxu0 %v98_v2  ;;  %1317 = vmatpush3.msra.mxu1 %v100_v5  ;;  %v430_v12 = vld [vmem:[#allocation7 + $0x38] sm:$0xff]  ;;  %v429_v14 = vld [vmem:[#allocation7 + $0x30] sm:$0xff]  ;;  %v427_v17 = vld [vmem:[#allocation7 + $0x20] sm:$0xff] }
  0x44   :  { %1312 = vmatmul.mubr.msk.f32.vlgmr.msra.gmra.mxu0 %vm135_vm1, %v110_v4  ;;  %1321 = vmatprep.subr.mxu0 %v1573_v0  ;;  %v1226_v18 = vld [vmem:[#allocation6] ss:$0 sm:$0xff]  ;;  %v1227_v19 = vld [vmem:[#allocation6 + $0x1] ss:$0 sm:$0xff]  ;;  %v1228_v25 = vld [vmem:[#allocation6 + $0x2] ss:$0 sm:$0xff] }
  0x45   :  { %1319 = vmatmul.mubr.msk.f32.vlgmr.msra.gmra.mxu1 %vm135_vm1, %v110_v4  ;;  %1322 = vmatpush3.msra.mxu0 %v103_v6  ;;  %v1229_v29 = vld [vmem:[#allocation6 + $0x3] ss:$0 sm:$0xff]  ;;  %v433_v38 = vld [vmem:[#allocation7 + $0x50] sm:$0xff]  ;;  %v432_v40 = vld [vmem:[#allocation7 + $0x48] sm:$0xff] }
  0x46   :  { %1323 = vmatprep.subr.mxu0 %v1573_v0  ;;  %1325 = vmatprep.mubr.msk.f32.mxu0 %vm1574_vm0, %v1573_v0  ;;  %v434_v34 = vld [vmem:[#allocation7 + $0x58] sm:$0xff]  ;;  %v437_v39 = vld [vmem:[#allocation7 + $0x70] sm:$0xff]  ;;  %v431_v41 = vld [vmem:[#allocation7 + $0x40] sm:$0xff] }
  0x47   :  { %1324 = vmatpush3.msra.mxu0 %v102_v7  ;;  %1328 = vmatprep.subr.mxu1 %v1573_v0  ;;  %v438_v36 = vld [vmem:[#allocation7 + $0x78] sm:$0xff]  ;;  %v436_v42 = vld [vmem:[#allocation7 + $0x68] sm:$0xff]  ;;  %v435_v44 = vld [vmem:[#allocation7 + $0x60] sm:$0xff] }
  0x48   :  { %1326 = vmatmul.mubr.msk.f32.vlgmr.msra.gmra.mxu0 %vm135_vm1, %v110_v4  ;;  %1329 = vmatpush3.msra.mxu1 %v105_v8  ;;  %v767_v46 = vld [vmem:[#allocation9 + $0x18] sm:$0xff]  ;;  %v766_v47 = vld [vmem:[#allocation9 + $0x10] sm:$0xff]  ;;  %v765_v49 = vld [vmem:[#allocation9 + $0x8] sm:$0xff] }
  0x49   :  { %1330 = vmatprep.subr.mxu1 %v1573_v0  ;;  %1332 = vmatprep.mubr.msk.f32.mxu1 %vm1574_vm0, %v1573_v0  ;;  %v771_v48 = vld [vmem:[#allocation9 + $0x38] sm:$0xff]  ;;  %v770_v50 = vld [vmem:[#allocation9 + $0x30] sm:$0xff]  ;;  %v764_v51 = vld [vmem:[#allocation9] sm:$0xff] }
  0x4a   :  { %1331 = vmatpush3.msra.mxu1 %v104_v9  ;;  %1335 = vmatprep.subr.mxu0 %v1573_v0  ;;  %v769_v52 = vld [vmem:[#allocation9 + $0x28] sm:$0xff]  ;;  %v768_v53 = vld [vmem:[#allocation9 + $0x20] sm:$0xff]  ;;  %v1234_v54 = vld [vmem:[%s1775_s4] ss:$0 sm:$0xff] }
  0x4b   :  { %1333 = vmatmul.mubr.msk.f32.vlgmr.msra.gmra.mxu1 %vm135_vm1, %v110_v4  ;;  %1346 = vmatprep.subr.mxu1 %v1573_v0  ;;  %v1235_v55 = vld [vmem:[%s1775_s4 + $0x1] ss:$0 sm:$0xff]  ;;  %v1236_v62 = vld [vmem:[%s1775_s4 + $0x2] ss:$0 sm:$0xff]  ;;  %v1237_v1 = vld [vmem:[%s1775_s4 + $0x3] ss:$0 sm:$0xff] }
  0x4c   :  { %1343 = vmatprep.mubr.msk.f32.mxu0 %vm1574_vm0, %v1573_v0  ;;  %1354 = vmatprep.mubr.msk.f32.mxu1 %vm1574_vm0, %v1573_v0  ;;  %v775_v7 = vld [vmem:[#allocation9 + $0x58] sm:$0xff] }
  0x4d   :  { %1336 = vmatpush3.msra.mxu0 %v426_v10  ;;  %1347 = vmatpush3.msra.mxu1 %v430_v12  ;;  %v779_v9 = vld [vmem:[#allocation9 + $0x78] sm:$0xff]  ;;  %v778_v12 = vld [vmem:[#allocation9 + $0x70] sm:$0xff] }
  0x4e   :  { %1337 = vmatprep.subr.mxu0 %v1573_v0  ;;  %1348 = vmatprep.subr.mxu1 %v1573_v0 }
  0x4f   :  { %1338 = vmatpush3.msra.mxu0 %v425_v11  ;;  %1349 = vmatpush3.msra.mxu1 %v429_v14  ;;  %v774_v11 = vld [vmem:[#allocation9 + $0x50] sm:$0xff]  ;;  %v772_v14 = vld [vmem:[#allocation9 + $0x40] sm:$0xff] }
  0x50   :  { %1339 = vmatprep.subr.mxu0 %v1573_v0  ;;  %1350 = vmatprep.subr.mxu1 %v1573_v0 }
  0x51   :  { %1340 = vmatpush3.msra.mxu0 %v424_v13  ;;  %1351 = vmatpush3.msra.mxu1 %v428_v16  ;;  %v773_v13 = vld [vmem:[#allocation9 + $0x48] sm:$0xff]  ;;  %v776_v16 = vld [vmem:[#allocation9 + $0x60] sm:$0xff] }
  0x52   :  { %1341 = vmatprep.subr.mxu0 %v1573_v0  ;;  %1352 = vmatprep.subr.mxu1 %v1573_v0 }
  0x53   :  { %1342 = vmatpush3.msra.mxu0 %v423_v15  ;;  %1353 = vmatpush3.msra.mxu1 %v427_v17  ;;  %v777_v15 = vld [vmem:[#allocation9 + $0x68] sm:$0xff] }
  0x54   :  { %1357 = vmatprep.subr.mxu0 %v1573_v0  ;;  %1368 = vmatprep.subr.mxu1 %v1573_v0 }
 0x104   :  { %v205_v20 = vpop.f32.mrf.mxu0 }
 0x105   :  { %v206_v21 = vadd.f32 %v1226_v18, %v205_v20  ;;  %v275_v22 = vpop.f32.mrf.mxu1  ;;  %v1243_v20 = vld [vmem:[%s1777_s6 + $0x1] ss:$0 sm:$0xff] }
 0x106   :  { %v1313_v23 = vpop.f32.mrf.mxu0  ;;  %v276_v24 = vadd.f32 %v1227_v19, %v275_v22  ;;  %v1242_v19 = vld [vmem:[%s1777_s6] ss:$0 sm:$0xff] }
 0x107   :  { %1434 = vtanh.f32 %v206_v21  ;;  %v1320_v26 = vpop.f32.mrf.mxu1 }
 0x108   :  { %1436 = vtanh.f32 %v276_v24  ;;  %v345_v27 = vpop.f32.mrf.mxu0 }
 0x109   :  { %v346_v28 = vadd.f32 %v1228_v25, %v345_v27 }
 0x10a   :  { %v1327_v30 = vpop.f32.mrf.mxu0 }
 0x10b   :  { %v415_v31 = vpop.f32.mrf.mxu1  ;;  %1438 = vtanh.f32 %v346_v28  ;;  %v1245_v28 = vld [vmem:[%s1777_s6 + $0x3] ss:$0 sm:$0xff] }
 0x10c   :  { %v416_v32 = vadd.f32 %v1229_v29, %v415_v31 }
 0x10d   :  { %v1334_v33 = vpop.f32.mrf.mxu1 }
 0x10e   :  { %1440 = vtanh.f32 %v416_v32 }
 0x114   :  { %v1435_v35 = vpop.eup %1434 }
 0x115   :  { %v1437_v37 = vpop.eup %1436  ;;  %1344 = vmatmul.mubr.msk.f32.vlgmr.msra.gmra.mxu0 %vm467_vm2, %v1435_v35  ;;  %v1251_v35 = vld [vmem:[%s1778_s7 + $0x1] ss:$0 sm:$0xff] }
 0x116   :  { %1358 = vmatpush3.msra.mxu0 %v434_v34  ;;  %1355 = vmatmul.mubr.msk.f32.vlgmr.msra.gmra.mxu1 %vm467_vm2, %v1437_v37  ;;  %v1250_v34 = vld [vmem:[%s1778_s7] ss:$0 sm:$0xff] }
 0x117   :  { %1359 = vmatprep.subr.mxu0 %v1573_v0  ;;  %1369 = vmatpush3.msra.mxu1 %v438_v36 }
 0x118   :  { %1360 = vmatpush3.msra.mxu0 %v433_v38  ;;  %1370 = vmatprep.subr.mxu1 %v1573_v0  ;;  %v1439_v43 = vpop.eup %1438 }
 0x119   :  { %1361 = vmatprep.subr.mxu0 %v1573_v0  ;;  %1371 = vmatpush3.msra.mxu1 %v437_v39 }
 0x11a   :  { %1362 = vmatpush3.msra.mxu0 %v432_v40  ;;  %1372 = vmatprep.subr.mxu1 %v1573_v0 }
 0x11b   :  { %1363 = vmatprep.subr.mxu0 %v1573_v0  ;;  %1365 = vmatprep.mubr.msk.f32.mxu0 %vm1574_vm0, %v1573_v0  ;;  %v1441_v45 = vpop.eup %1440 }
 0x11c   :  { %1364 = vmatpush3.msra.mxu0 %v431_v41  ;;  %1373 = vmatpush3.msra.mxu1 %v436_v42  ;;  %v1252_v42 = vld [vmem:[%s1778_s7 + $0x2] ss:$0 sm:$0xff] }
 0x11d   :  { %1366 = vmatmul.mubr.msk.f32.vlgmr.msra.gmra.mxu0 %vm467_vm2, %v1439_v43  ;;  %1374 = vmatprep.subr.mxu1 %v1573_v0 }
 0x11e   :  { %1375 = vmatpush3.msra.mxu1 %v435_v44  ;;  %1376 = vmatprep.mubr.msk.f32.mxu1 %vm1574_vm0, %v1573_v0  ;;  %v1253_v44 = vld [vmem:[%s1778_s7 + $0x3] ss:$0 sm:$0xff] }
 0x11f   :  { %1377 = vmatmul.mubr.msk.f32.vlgmr.msra.gmra.mxu1 %vm467_vm2, %v1441_v45  ;;  %1379 = vmatprep.subr.mxu0 %v1573_v0 }
 0x120   :  { %1390 = vmatprep.subr.mxu1 %v1573_v0  ;;  %1387 = vmatprep.mubr.msk.f32.mxu0 %vm1574_vm0, %v1573_v0 }
 0x121   :  { %1398 = vmatprep.mubr.msk.f32.mxu1 %vm1574_vm0, %v1573_v0  ;;  %1380 = vmatpush3.msra.mxu0 %v767_v46 }
 0x122   :  { %1381 = vmatprep.subr.mxu0 %v1573_v0  ;;  %1391 = vmatpush3.msra.mxu1 %v771_v48 }
 0x123   :  { %1382 = vmatpush3.msra.mxu0 %v766_v47  ;;  %1392 = vmatprep.subr.mxu1 %v1573_v0 }
 0x124   :  { %1383 = vmatprep.subr.mxu0 %v1573_v0  ;;  %1393 = vmatpush3.msra.mxu1 %v770_v50  ;;  %v1153_v50 = vlaneseq }
 0x125   :  { %1384 = vmatpush3.msra.mxu0 %v765_v49  ;;  %1394 = vmatprep.subr.mxu1 %v1573_v0 }
 0x126   :  { %1385 = vmatprep.subr.mxu0 %v1573_v0  ;;  %1395 = vmatpush3.msra.mxu1 %v769_v52  ;;  %v1154_v52 = vand.u32 127, %v1153_v50 }
 0x127   :  { %1386 = vmatpush3.msra.mxu0 %v764_v51  ;;  %1396 = vmatprep.subr.mxu1 %v1573_v0 }
 0x128   :  { %1401 = vmatprep.subr.mxu0 %v1573_v0  ;;  %1397 = vmatpush3.msra.mxu1 %v768_v53  ;;  %v1156_v53 = vshrl.u32 %v1153_v50, 7 }
 0x129   :  { %1412 = vmatprep.subr.mxu1 %v1573_v0 }
 0x1d5   :  { %v537_v56 = vpop.f32.mrf.mxu0 }
 0x1d6   :  { %v538_v57 = vadd.f32 %v1234_v54, %v537_v56  ;;  %v610_v58 = vpop.f32.mrf.mxu1 }
 0x1d7   :  { %v1345_v59 = vpop.f32.mrf.mxu0  ;;  %v611_v60 = vadd.f32 %v1235_v55, %v610_v58  ;;  %v1157_v55 = vsub.s32 %v1154_v52, %v1156_v53 }
 0x1d8   :  { %1442 = vtanh.f32 %v538_v57  ;;  %v1356_v61 = vpop.f32.mrf.mxu1 }
 0x1d9   :  { %1444 = vtanh.f32 %v611_v60 }
 0x1dd   :  { %v683_v63 = vpop.f32.mrf.mxu0 }
 0x1de   :  { %v684_v2 = vadd.f32 %v1236_v62, %v683_v63 }
 0x1df   :  { %v1367_v3 = vpop.f32.mrf.mxu0  ;;  %v756_v4 = vpop.f32.mrf.mxu1 }
 0x1e0   :  { %1446 = vtanh.f32 %v684_v2  ;;  %v757_v5 = vadd.f32 %v1237_v1, %v756_v4  ;;  %v1254_v2 = vld [vmem:[%s1779_s8] ss:$0 sm:$0xff] }
 0x1e1   :  { %v1378_v6 = vpop.f32.mrf.mxu1 }
 0x1e2   :  { %1448 = vtanh.f32 %v757_v5 }
 0x1e5   :  { %v1443_v8 = vpop.eup %1442 }
 0x1e6   :  { %v1445_v10 = vpop.eup %1444  ;;  %1388 = vmatmul.mubr.msk.f32.vlgmr.msra.gmra.mxu0 %vm467_vm2, %v1443_v8 }
 0x1e7   :  { %1402 = vmatpush3.msra.mxu0 %v775_v7  ;;  %1399 = vmatmul.mubr.msk.f32.vlgmr.msra.gmra.mxu1 %vm467_vm2, %v1445_v10 }
 0x1e8   :  { %1403 = vmatprep.subr.mxu0 %v1573_v0  ;;  %1413 = vmatpush3.msra.mxu1 %v779_v9 }
 0x1e9   :  { %1404 = vmatpush3.msra.mxu0 %v774_v11  ;;  %1414 = vmatprep.subr.mxu1 %v1573_v0 }
 0x1ea   :  { %1405 = vmatprep.subr.mxu0 %v1573_v0  ;;  %1415 = vmatpush3.msra.mxu1 %v778_v12 }
 0x1eb   :  { %1406 = vmatpush3.msra.mxu0 %v773_v13  ;;  %1416 = vmatprep.subr.mxu1 %v1573_v0 }
 0x1ec   :  { %1407 = vmatprep.subr.mxu0 %v1573_v0  ;;  %1409 = vmatprep.mubr.msk.f32.mxu0 %vm1574_vm0, %v1573_v0 }
 0x1ed   :  { %v1447_v17 = vpop.eup %1446  ;;  %1408 = vmatpush3.msra.mxu0 %v772_v14  ;;  %1417 = vmatpush3.msra.mxu1 %v777_v15 }
 0x1ee   :  { %1410 = vmatmul.mubr.msk.f32.vlgmr.msra.gmra.mxu0 %vm467_vm2, %v1447_v17  ;;  %1418 = vmatprep.subr.mxu1 %v1573_v0 }
 0x1ef   :  { %v1449_v18 = vpop.eup %1448  ;;  %1419 = vmatpush3.msra.mxu1 %v776_v16  ;;  %1420 = vmatprep.mubr.msk.f32.mxu1 %vm1574_vm0, %v1573_v0  ;;  %v1244_v0 = vld [vmem:[%s1777_s6 + $0x2] ss:$0 sm:$0xff] }
 0x1f0   :  { %1421 = vmatmul.mubr.msk.f32.vlgmr.msra.gmra.mxu1 %vm467_vm2, %v1449_v18 }
 0x2a6   :  { %v877_v21 = vpop.f32.mrf.mxu0 }
 0x2a7   :  { %v878_v22 = vadd.f32 %v1242_v19, %v877_v21  ;;  %v950_v23 = vpop.f32.mrf.mxu1 }
 0x2a8   :  { %v1389_v24 = vpop.f32.mrf.mxu0  ;;  %v951_v25 = vadd.f32 %v1243_v20, %v950_v23 }
 0x2a9   :  { %1450 = vtanh.f32 %v878_v22  ;;  %v1400_v26 = vpop.f32.mrf.mxu1 }
 0x2aa   :  { %1452 = vtanh.f32 %v951_v25 }
 0x2ae   :  { %v1023_v27 = vpop.f32.mrf.mxu0 }
 0x2af   :  { %v1024_v29 = vadd.f32 %v1244_v0, %v1023_v27 }
 0x2b0   :  { %v1411_v30 = vpop.f32.mrf.mxu0  ;;  %v1096_v31 = vpop.f32.mrf.mxu1 }
 0x2b1   :  { %1454 = vtanh.f32 %v1024_v29  ;;  %v1097_v32 = vadd.f32 %v1245_v28, %v1096_v31 }
 0x2b2   :  { %v1422_v33 = vpop.f32.mrf.mxu1 }
 0x2b3   :  { %1456 = vtanh.f32 %v1097_v32 }
 0x2b6   :  { %v1451_v36 = vpop.eup %1450 }
 0x2b7   :  { %v1453_v37 = vpop.eup %1452  ;;  %v1133_v38 = vmul.f32 %v1451_v36, %v1250_v34 }
 0x2b8   :  { %v1134_v39 = vmul.f32 %v1453_v37, %v1251_v35 }
 0x2b9   :  { %v1137_v40 = vsel %vm467_vm2, %v1133_v38, 0.0 }
 0x2ba   :  { %1138 = vadd.xlane.f32.xlu0 %v1137_v40  ;;  %v1140_v41 = vsel %vm467_vm2, %v1134_v39, 0.0 }
 0x2be   :  { %v1455_v43 = vpop.eup %1454  ;;  %1141 = vadd.xlane.f32.xlu0 %v1140_v41 }
 0x2bf   :  { %v1135_v45 = vmul.f32 %v1455_v43, %v1252_v42 }
 0x2c0   :  { %v1457_v46 = vpop.eup %1456 }
 0x2c1   :  { %v1143_v47 = vsel %vm467_vm2, %v1135_v45, 0.0  ;;  %v1136_v48 = vmul.f32 %v1457_v46, %v1253_v44 }
 0x2c2   :  { %1144 = vadd.xlane.f32.xlu1 %v1143_v47 }
 0x2c3   :  { %v1146_v49 = vsel %vm467_vm2, %v1136_v48, 0.0 }
 0x2c6   :  { %1147 = vadd.xlane.f32.xlu1 %v1146_v49 }
 0x343   :  { %v1139_v51 = vpop.xlane.xlu0 %1138 }
 0x344   :  { %v1158_v59 = vrot.slane %v1139_v51, %v1157_v55 }
 0x347   :  { %v1142_v54 = vpop.xlane.xlu0 %1141 }
 0x348   :  { %v1162_v57 = vrot.slane %v1142_v54, %v1157_v55 }
 0x34a   :  { %v1172_v62 = vsel %vm1171_vm3, %v1162_v57, %v1158_v59 }
 0x34b   :  { %v1145_v56 = vpop.xlane.xlu1 %1144 }
 0x34c   :  { %v1166_v58 = vrot.slane %v1145_v56, %v1157_v55 }
 0x34e   :  { %v1174_v63 = vsel %vm1173_vm4, %v1166_v58, %v1172_v62 }
 0x34f   :  { %v1148_v60 = vpop.xlane.xlu1 %1147 }
 0x350   :  { %v1170_v61 = vrot.slane %v1148_v60, %v1157_v55 }
 0x352   :  { %v1176_v1 = vsel %vm1175_vm5, %v1170_v61, %v1174_v63 }
 0x353   :  { %1178 = vxpose.xlu0.b32.start.end [1/1] (short) (narrow) %v1176_v1, 8 }
 0x3cf   :  { %v1194_v3 = vpop.trf.xlu0 }
 0x3d0   :  { %v1216_v4 = vadd.f32 %v1254_v2, %v1194_v3 }
 0x3d2   :  { %1218 = vst.msk [vmem:[%s1780_s9] sm:$0xff] %vm1217_vm6, %v1216_v4 }
 0x3d3   :  { %1223 = vsyncpa [#allocation3], 1 }
 0x3d4   :  { %1224 = vsyncpa [#allocation5], 1 }
 0x3d5   :  { %1225 = vsyncpa [#allocation8], 1 }

</bundles_post_ra>
